<compile_context>
chip_gen: v7x
topology: tpu7x:2x2x1
jax: 0.10.0
libtpu: 0.0.40
codegen_flags: <defaults>
</compile_context>

<pallas_src>
import functools

import jax
import jax.numpy as jnp
import numpy as np
from jax.experimental import pallas as pl
from jax.experimental.pallas import tpu as pltpu


def _round_up(v, m):
    return (v + m - 1) // m * m


def _user_encoder_kernel(x_ref, wt_ref, b_ref, q_ref, o_ref, *, n_valid):
    # x_ref : (TB, N_pad, F_pad)  block of clicked-news vectors (stream dtype)
    # wt_ref: (F_pad, Q_pad)      projection weight, pre-transposed (stream dtype)
    # b_ref : (1, Q_pad)          projection bias (f32)
    # q_ref : (1, Q_pad)          attention query vector (f32)
    # o_ref : (TB, F_pad)         user vectors for this batch block
    tb, n_pad, f = x_ref.shape
    q_dim = wt_ref.shape[1]

    # Projection: one MXU matmul over all TB*N rows.  N_pad is a multiple of 8
    # and F_pad is lane-aligned (or full-extent), so the reshape is a free view.
    x2 = x_ref[...].reshape(tb * n_pad, f)
    temp = jnp.tanh(
        jnp.dot(x2, wt_ref[...], preferred_element_type=jnp.float32)
        + b_ref[...]
    )                                                     # (TB*N_pad, Q_pad) f32
    temp = temp.reshape(tb, n_pad, q_dim)

    # Attention scores: VPU multiply + lane reduce over Q (not a 1-col matmul).
    scores = jnp.sum(temp * q_ref[...], axis=-1)          # (TB, N_pad) f32

    # Padded clicked-news positions (zero rows still give score = tanh(b).q, so
    # they must be masked out of the softmax).
    if n_valid != n_pad:
        pos = jax.lax.broadcasted_iota(jnp.int32, (tb, n_pad), 1)
        scores = jnp.where(pos < n_valid, scores, -jnp.inf)

    # Row-wise softmax over the clicked-news positions.
    m = jnp.max(scores, axis=-1, keepdims=True)           # (TB, 1)
    e = jnp.exp(scores - m)                               # (TB, N_pad)
    denom = jnp.sum(e, axis=-1, keepdims=True)            # (TB, 1)
    attn = e * pl.reciprocal(denom)                       # exact; (TB,1) -> negligible

    # Weighted sum over N, chunked in 8-sublane slabs so no (TB, N, F) f32
    # intermediate is ever materialized (frees VMEM for a larger TB).
    acc = jnp.zeros((tb, f), jnp.float32)
    for c in range(0, n_pad, 8):
        xc = x_ref[:, c:c + 8, :].astype(jnp.float32)     # (TB, 8, F) f32 slab
        ac = attn[:, c:c + 8]                             # (TB, 8)
        acc = acc + jnp.sum(ac[:, :, None] * xc, axis=1)
    o_ref[...] = acc.astype(o_ref.dtype)


def _vmem_config():
    """Per-chip scratch budget (buffers + intermediates) and scoped VMEM limit."""
    try:
        cap = pltpu.get_tpu_info().vmem_capacity_bytes
    except Exception:
        cap = 64 * 1024 * 1024                     # conservative (v7x per-TC)
    budget = min(cap // 2, 56 * 1024 * 1024)       # v5e/v6e: 56 MiB, v7x: 32 MiB
    limit = min(cap * 3 // 4, 96 * 1024 * 1024)    # v5e/v6e: 96 MiB, v7x: 48 MiB
    return budget, int(limit)


def _choose_batch_tile(B, n_pad, f_pad, q_pad, stream_bytes, out_bytes,
                       max_tb, budget):
    """Pick the batch tile TB (multiple of 8) that fits the VMEM budget
    (double-buffered I/O + in-kernel intermediates, sized by the actual
    streaming dtype) while keeping enough grid steps for pipelining / megacore."""
    per_item = (2 * n_pad * f_pad * stream_bytes   # x block, double-buffered
                + n_pad * q_pad * 4                # temp (f32)
                + 8 * f_pad * 4                    # per-chunk f32 slab
                + f_pad * 4                        # f32 accumulator
                + 2 * f_pad * out_bytes)           # out block, double-buffered
    cap = max(8, min(max_tb, budget // per_item) // 8 * 8)
    # >= 4 grid steps for large B (pipeline overlap + v7x TC sharding),
    # >= 2 when B allows; tiny B degrades gracefully to one 8-row block.
    tb_steps = max(8, (B // 4) // 8 * 8)
    tb = min(cap, tb_steps, _round_up(B, 8))
    # Shrink TB to minimize padded-tail work at the same number of steps.
    steps = pl.cdiv(B, tb)
    tb = min(tb, _round_up(pl.cdiv(B, steps), 8))
    return tb


def user_encoder(clicked_news_vector, linear_w, linear_b, query_vec,
                 *, max_tb=512, stream_dtype="auto", out_dtype=None):
    """NAML UserEncoder forward.

    clicked_news_vector: (B, N, F)   linear_w: (Q, F)
    linear_b:            (Q,)        query_vec: (Q,)
    stream_dtype: "auto" (default) streams x / W^T as bf16 when inputs are f32
                  (softmax & accumulation stay f32 in-kernel); pass jnp.float32
                  for exact f32 streaming.
    """
    x = jnp.asarray(clicked_news_vector)
    B, N, F = x.shape
    Q = linear_w.shape[0]
    in_dtype = x.dtype
    out_dtype = in_dtype if out_dtype is None else out_dtype

    if stream_dtype == "auto":
        stream_dtype = jnp.bfloat16 if in_dtype == jnp.float32 else in_dtype

    w_t = jnp.asarray(linear_w, jnp.float32).T              # (F, Q)
    b2 = jnp.asarray(linear_b, jnp.float32).reshape(1, Q)
    q2 = jnp.asarray(query_vec, jnp.float32).reshape(1, Q)

    # Lane padding (exact: zero lanes contribute nothing) for production shapes.
    F_pad = _round_up(F, 128) if (F > 128 and F % 128) else F
    Q_pad = _round_up(Q, 128) if (Q > 128 and Q % 128) else Q
    # Sublane padding of N so the (TB,N,F)<->(TB*N,F) reshapes are free views;
    # padded positions are masked to -inf before the softmax inside the kernel.
    N_pad = _round_up(N, 8) if N % 8 else N

    if F_pad != F or N_pad != N:
        x = jnp.pad(x, ((0, 0), (0, N_pad - N), (0, F_pad - F)))
    if F_pad != F or Q_pad != Q:
        w_t = jnp.pad(w_t, ((0, F_pad - F), (0, Q_pad - Q)))
    if Q_pad != Q:
        b2 = jnp.pad(b2, ((0, 0), (0, Q_pad - Q)))
        q2 = jnp.pad(q2, ((0, 0), (0, Q_pad - Q)))

    x = x.astype(stream_dtype)
    w_t = w_t.astype(stream_dtype)

    stream_bytes = jnp.dtype(stream_dtype).itemsize
    out_bytes = jnp.dtype(out_dtype).itemsize
    budget, vmem_limit = _vmem_config()
    TB = _choose_batch_tile(B, N_pad, F_pad, Q_pad, stream_bytes, out_bytes,
                            max_tb, budget)

    # Pad B up to a multiple of TB (zero rows, stripped after the call) instead
    # of shrinking TB to a divisor of an awkward B.
    B_pad = _round_up(B, TB)
    if B_pad != B:
        x = jnp.pad(x, ((0, B_pad - B), (0, 0), (0, 0)))
    grid = (B_pad // TB,)

    kernel = functools.partial(_user_encoder_kernel, n_valid=N)

    out = pl.pallas_call(
        kernel,
        out_shape=jax.ShapeDtypeStruct((B_pad, F_pad), out_dtype),
        grid_spec=pltpu.PrefetchScalarGridSpec(
            num_scalar_prefetch=0,
            grid=grid,
            in_specs=[
                pl.BlockSpec((TB, N_pad, F_pad), lambda i: (i, 0, 0)),
                pl.BlockSpec((F_pad, Q_pad), lambda i: (0, 0)),
                pl.BlockSpec((1, Q_pad), lambda i: (0, 0)),
                pl.BlockSpec((1, Q_pad), lambda i: (0, 0)),
            ],
            out_specs=pl.BlockSpec((TB, F_pad), lambda i: (i, 0)),
        ),
        compiler_params=pltpu.CompilerParams(
            dimension_semantics=("parallel",),   # v7x: shard steps on 2 TCs
            vmem_limit_bytes=vmem_limit,
        ),
    )(x, w_t, b2, q2)

    if B_pad != B or F_pad != F:
        out = out[:B, :F]
    return out


def _reference(x, w, b, q):
    temp = jnp.tanh(jnp.einsum("bnf,qf->bnq", x, w) + b)
    scores = jnp.einsum("bnq,q->bn", temp, q)
    weights = jax.nn.softmax(scores, axis=1)
    return jnp.einsum("bn,bnf->bf", weights, x)


if __name__ == "__main__":
    # Config: num_filters=32, query_vector_dim=16; batch=2, num_clicked_news=8.
    B, N, F, Q = 2, 8, 32, 16

    key = jax.random.PRNGKey(0)
    k_x, k_w, k_b, k_q = jax.random.split(key, 4)

    clicked = jax.random.normal(k_x, (B, N, F), jnp.float32)

    # Deterministic parameter init mirroring PyTorch defaults:
    #   nn.Linear(F, Q): weight/bias ~ U(-1/sqrt(F), 1/sqrt(F))
    #   attention query vector ~ U(-0.1, 0.1)
    bound = 1.0 / np.sqrt(F)
    linear_w = jax.random.uniform(k_w, (Q, F), jnp.float32, -bound, bound)
    linear_b = jax.random.uniform(k_b, (Q,), jnp.float32, -bound, bound)
    query_vec = jax.random.uniform(k_q, (Q,), jnp.float32, -0.1, 0.1)

    ref = _reference(clicked, linear_w, linear_b, query_vec)

    # 1) Exact f32 streaming path (tight parity with the PyTorch forward).
    out_f32 = jax.block_until_ready(
        user_encoder(clicked, linear_w, linear_b, query_vec,
                     stream_dtype=jnp.float32))
    np.testing.assert_allclose(np.asarray(out_f32), np.asarray(ref),
                               rtol=1e-4, atol=1e-4)

    # 2) Default path: bf16 streaming of x / W^T (the production, HBM-bound config).
    out_bf16 = jax.block_until_ready(
        user_encoder(clicked, linear_w, linear_b, query_vec))
    np.testing.assert_allclose(np.asarray(out_bf16), np.asarray(ref),
                               rtol=5e-2, atol=5e-2)

    # 3) Multi-block + padding path: N not a multiple of 8 (masked softmax) and
    #    B not a multiple of TB (batch padding), several grid steps.
    B2, N2 = 10, 6
    clicked2 = jax.random.normal(jax.random.PRNGKey(1), (B2, N2, F), jnp.float32)
    out2 = jax.block_until_ready(
        user_encoder(clicked2, linear_w, linear_b, query_vec,
                     stream_dtype=jnp.float32))
    ref2 = _reference(clicked2, linear_w, linear_b, query_vec)
    np.testing.assert_allclose(np.asarray(out2), np.asarray(ref2),
                               rtol=1e-4, atol=1e-4)

    print("KERNEL_OK")
</pallas_src>

<mosaic_0001>
module attributes {stable_mosaic.version = 11 : i64} {
  func.func @_user_encoder_kernel(%arg0: i32, %arg1: memref<8x8x32xf32, #tpu.memory_space<vmem>>, %arg2: memref<32x16xf32, #tpu.memory_space<vmem>>, %arg3: memref<1x16xf32, #tpu.memory_space<vmem>>, %arg4: memref<1x16xf32, #tpu.memory_space<vmem>>, %arg5: memref<8x32xf32, #tpu.memory_space<vmem>>) attributes {dimension_semantics = [#tpu.dimension_semantics<parallel>], iteration_bounds = array<i64: 1>, scalar_prefetch = 0 : i64, scratch_operands = 0 : i64, tpu.core_type = #tpu.core_type<tc>, window_params = [{transform_indices = @transform_0, window_bounds = array<i64: 8, 8, 32>}, {pipeline_mode = #tpu.pipeline_mode<synchronous>, transform_indices = @transform_1, window_bounds = array<i64: 32, 16>}, {pipeline_mode = #tpu.pipeline_mode<synchronous>, transform_indices = @transform_2, window_bounds = array<i64: 1, 16>}, {pipeline_mode = #tpu.pipeline_mode<synchronous>, transform_indices = @transform_3, window_bounds = array<i64: 1, 16>}, {transform_indices = @transform_4, window_bounds = array<i64: 8, 32>}]} {
    %c0 = arith.constant 0 : index
    %c0_0 = arith.constant 0 : index
    %c0_1 = arith.constant 0 : index
    %0 = vector.load %arg1[%c0, %c0_0, %c0_1] : memref<8x8x32xf32, #tpu.memory_space<vmem>>, vector<8x8x32xf32>
    %1 = vector.shape_cast %0 : vector<8x8x32xf32> to vector<64x32xf32>
    %c0_2 = arith.constant 0 : index
    %c0_3 = arith.constant 0 : index
    %2 = vector.load %arg2[%c0_2, %c0_3] : memref<32x16xf32, #tpu.memory_space<vmem>>, vector<32x16xf32>
    %cst = arith.constant dense<0.000000e+00> : vector<64x16xf32>
    %3 = tpu.matmul %1, %2, %cst {dimension_numbers = #tpu.dot_dimension_numbers<[1], [0], [0], [1], [0, 0, 1, 1], [], []>} : vector<64x32xf32>, vector<32x16xf32>, vector<64x16xf32> -> vector<64x16xf32>
    %c0_4 = arith.constant 0 : index
    %c0_5 = arith.constant 0 : index
    %4 = vector.load %arg3[%c0_4, %c0_5] : memref<1x16xf32, #tpu.memory_space<vmem>>, vector<1x16xf32>
    %5 = vector.broadcast %4 : vector<1x16xf32> to vector<64x16xf32>
    %6 = arith.addf %3, %5 : vector<64x16xf32>
    %7 = math.tanh %6 : vector<64x16xf32>
    %8 = vector.shape_cast %7 : vector<64x16xf32> to vector<8x8x16xf32>
    %c0_6 = arith.constant 0 : index
    %c0_7 = arith.constant 0 : index
    %9 = vector.load %arg4[%c0_6, %c0_7] : memref<1x16xf32, #tpu.memory_space<vmem>>, vector<1x16xf32>
    %10 = vector.shape_cast %9 : vector<1x16xf32> to vector<1x1x16xf32>
    %11 = vector.broadcast %10 : vector<1x1x16xf32> to vector<8x8x16xf32>
    %12 = arith.mulf %8, %11 : vector<8x8x16xf32>
    %cst_8 = arith.constant dense<0.000000e+00> : vector<8x8xf32>
    %13 = vector.multi_reduction <add>, %12, %cst_8 [2] : vector<8x8x16xf32> to vector<8x8xf32>
    %cst_9 = arith.constant dense<0xFF800000> : vector<8xf32>
    %14 = vector.multi_reduction <maximumf>, %13, %cst_9 [1] : vector<8x8xf32> to vector<8xf32>
    %15 = vector.shape_cast %14 : vector<8xf32> to vector<8x1xf32>
    %16 = vector.broadcast %15 : vector<8x1xf32> to vector<8x8xf32>
    %17 = arith.subf %13, %16 : vector<8x8xf32>
    %18 = math.exp %17 : vector<8x8xf32>
    %cst_10 = arith.constant dense<0.000000e+00> : vector<8xf32>
    %19 = vector.multi_reduction <add>, %18, %cst_10 [1] : vector<8x8xf32> to vector<8xf32>
    %20 = vector.shape_cast %19 : vector<8xf32> to vector<8x1xf32>
    %21 = tpu.reciprocal %20 : vector<8x1xf32> -> vector<8x1xf32>
    %22 = vector.broadcast %21 : vector<8x1xf32> to vector<8x8xf32>
    %23 = arith.mulf %18, %22 : vector<8x8xf32>
    %cst_11 = arith.constant 0.000000e+00 : f32
    %24 = vector.broadcast %cst_11 : f32 to vector<8x32xf32>
    %c0_12 = arith.constant 0 : index
    %c0_13 = arith.constant 0 : index
    %c0_14 = arith.constant 0 : index
    %25 = vector.load %arg1[%c0_12, %c0_13, %c0_14] : memref<8x8x32xf32, #tpu.memory_space<vmem>>, vector<8x8x32xf32>
    %26 = vector.shape_cast %23 : vector<8x8xf32> to vector<8x8x1xf32>
    %27 = vector.broadcast %26 : vector<8x8x1xf32> to vector<8x8x32xf32>
    %28 = arith.mulf %27, %25 : vector<8x8x32xf32>
    %cst_15 = arith.constant dense<0.000000e+00> : vector<8x32xf32>
    %29 = vector.multi_reduction <add>, %28, %cst_15 [1] : vector<8x8x32xf32> to vector<8x32xf32>
    %30 = arith.addf %24, %29 : vector<8x32xf32>
    %c0_16 = arith.constant 0 : index
    %c0_17 = arith.constant 0 : index
    %31 = vector.load %arg5[%c0_16, %c0_17] : memref<8x32xf32, #tpu.memory_space<vmem>>, vector<8x32xf32>
    tpu.vector_store %arg5[%c0_16, %c0_17], %30 {strides = array<i32>} : memref<8x32xf32, #tpu.memory_space<vmem>>, vector<8x32xf32>,
    return
  }
  func.func @transform_0(%arg0: i32) -> (i32, i32, i32) {
    %c0_i32 = arith.constant 0 : i32
    %c0_i32_0 = arith.constant 0 : i32
    %c0_i32_1 = arith.constant 0 : i32
    return %arg0, %c0_i32, %c0_i32_0 : i32, i32, i32
  }
  func.func @transform_1(%arg0: i32) -> (i32, i32) {
    %c0_i32 = arith.constant 0 : i32
    %c0_i32_0 = arith.constant 0 : i32
    %c0_i32_1 = arith.constant 0 : i32
    return %c0_i32, %c0_i32_0 : i32, i32
  }
  func.func @transform_2(%arg0: i32) -> (i32, i32) {
    %c0_i32 = arith.constant 0 : i32
    %c0_i32_0 = arith.constant 0 : i32
    %c0_i32_1 = arith.constant 0 : i32
    return %c0_i32, %c0_i32_0 : i32, i32
  }
  func.func @transform_3(%arg0: i32) -> (i32, i32) {
    %c0_i32 = arith.constant 0 : i32
    %c0_i32_0 = arith.constant 0 : i32
    %c0_i32_1 = arith.constant 0 : i32
    return %c0_i32, %c0_i32_0 : i32, i32
  }
  func.func @transform_4(%arg0: i32) -> (i32, i32) {
    %c0_i32 = arith.constant 0 : i32
    %c0_i32_0 = arith.constant 0 : i32
    return %arg0, %c0_i32 : i32, i32
  }
}

</mosaic_0001>

<bundles_post_ra>
// kernel: tpu_custom_call.1
= control target key start
LH: loop header
LB: loop body
LE: loop exit
PB: predicated region body
PF: predicated region fallthrough
CT: control target
= control target key end

     0   :  { %9 = vsyncpa [#allocation3], 0  ;;  %s980_s0 = inlined_call_operand.hbm [shape: f32[8,8,32], index: 0, kind: input, shape index: {}]   ;;  %s981_s1 = inlined_call_operand.vmem [shape: f32[32,16], index: 1, kind: input, shape index: {}]   ;;  %s982_s2 = inlined_call_operand.vmem [shape: f32[1,16], index: 2, kind: input, shape index: {}]   ;;  %s983_s3 = inlined_call_operand.vmem [shape: f32[1,16], index: 3, kind: input, shape index: {}]   ;;  %s984_s4 = inlined_call_operand.hbm [shape: f32[8,32], index: 4, kind: output, shape index: {}]  }
   0x1   :  { %10 = vsyncpa [#allocation4], 0  ;;  %s767_s15 = smov [#allocation2]   ;;  %s719_s19 = scalar_lea.hbm %s980_s0, 1024 }
   0x2   :  { %s16_s16 = sshll.u32 %s767_s15, 4  ;;  %p720_p0 = scmp.ne.s32.totalorder %s980_s0, %s719_s19  ;;  %s17_s16 = int_to_ptr.vmem [resolvable:$true] %s16_s16 }
   0x3   :  { %p723_p1 = scmp.lt.u32.totalorder %s719_s19, %s980_s0 }
   0x5   :  { %p725_p2 = pnand %p723_p1, %p720_p0 }
   0x7   :  { %728 = shalt.err (!%p725_p2)
}
   0x8   :  { %s729_s24 = scalar_lea.vmem %s17_s16, 1024  ;;  %p734_p4 = scmp.lt.s32.totalorder %s17_s16, %s17_s16 }
   0x9   :  { %p730_p3 = scmp.ne.s32.totalorder %s17_s16, %s729_s24  ;;  %p735_p5 = scmp.lt.s32.totalorder %s729_s24, %s729_s24 }
   0xb   :  { %p736_p6 = por %p735_p5, %p734_p4 }
   0xd   :  { %p737_p7 = pnand %p736_p6, %p730_p3 }
   0xf   :  { %740 = shalt.err (!%p737_p7)
}
  0x10   :  { %s768_s25 = smov 128   ;;  %s769_s26 = smov 8  }
  0x11   :  { %22 = dma.hbm_to_vmem [thread:$0]  %s980_s0, 1024, %s17_s16, [#allocation3], %s768_s25, %s768_s25, %s769_s26  }
  0x12   :  { %763 = dma.done.wait [#allocation3], 1024  }
  0x13   :  { %764 = vsyncadd [#allocation3], 4294966272  ;;  %vm51_vm0 = vcmask 261120   ;;  %v40_v0 = vld [vmem:[%s981_s1] sm:$0xff]  ;;  %v41_v1 = vld [vmem:[%s981_s1 + $0x8] sm:$0xff]  ;;  %vm204_vm1 = vcmask 130048   ;;  %v237_v56 = vlaneseq }
  0x14   :  { %v42_v2 = vld [vmem:[%s981_s1 + $0x10] sm:$0xff]  ;;  %v666_v3 = vpack.c.bf16 %v41_v1, %v40_v0  ;;  %v43_v4 = vld [vmem:[%s981_s1 + $0x18] sm:$0xff]  ;;  %v821_v5 = vld [vmem:[#allocation2] sm:$0xff]  ;;  %vm271_vm2 = vcmask 1041409   ;;  %vm273_vm3 = vcmask 1042434   ;;  %vm275_vm4 = vcmask 1043459  }
  0x15   :  { %v670_v6 = vpack.c.bf16 %v43_v4, %v42_v2  ;;  %654 = vmatprep.mubr.msk.f32.mxu0 %vm51_vm0, %v821_v5  ;;  %v825_v7 = vld [vmem:[#allocation2 + $0x20] sm:$0xff]  ;;  %v829_v8 = vld [vmem:[#allocation2 + $0x8] sm:$0xff]  ;;  %v833_v10 = vld [vmem:[#allocation2 + $0x10] sm:$0xff]  ;;  %v238_v57 = vand.u32 127, %v237_v56  ;;  %v867_v58 = vshrl.u32 %v237_v56, 7  ;;  %vm277_vm5 = vcmask 1044484  }
  0x16   :  { %667 = vmatprep.subr.bf16.mxu0 %v666_v3  ;;  %674 = vmatprep.subr.bf16.mxu1 %v666_v3  ;;  %v831_v9 = vld [vmem:[#allocation2 + $0x28] sm:$0xff]  ;;  %v835_v11 = vld [vmem:[#allocation2 + $0x30] sm:$0xff]  ;;  %v843_v12 = vld [vmem:[#allocation2 + $0x18] sm:$0xff]  ;;  %vm279_vm6 = vcmask 1045509   ;;  %vm281_vm7 = vcmask 1046534   ;;  %vm283_vm8 = vcmask 1047559  }
  0x17   :  { %669 = vmatpush3.bf16.msra.mxu0 %v666_v3  ;;  %676 = vmatpush3.bf16.msra.mxu1 %v666_v3  ;;  %v847_v13 = vld [vmem:[#allocation2 + $0x38] sm:$0xff]  ;;  %v624_v14 = vld [vmem:[%s982_s2] ss:$0 sm:$0xff]  ;;  %v870_v60 = vsub.s32 %v238_v57, %v867_v58  ;;  %vm286_vm9 = vcmask 64512  }
  0x18   :  { %671 = vmatprep.subr.bf16.mxu0 %v670_v6  ;;  %675 = vmatprep.subr.bf16.mxu1 %v670_v6  ;;  %v633_v31 = vld [vmem:[%s983_s3] ss:$0 sm:$0xff]  ;;  %s771_s3 = smov [#allocation5]  }
  0x19   :  { %660 = vmatprep.mubr.msk.f32.mxu1 %vm51_vm0, %v825_v7  ;;  %s615_s12 = sshll.u32 %s771_s3, 4  ;;  %s616_s12 = int_to_ptr.vmem [resolvable:$true] %s615_s12 }
  0x1a   :  { %s741_s13 = scalar_lea.vmem %s616_s12, 128  ;;  %p746_p9 = scmp.lt.s32.totalorder %s616_s12, %s616_s12 }
  0x1b   :  { %673 = vmatpush3.bf16.msra.mxu0 %v670_v6  ;;  %677 = vmatpush3.bf16.msra.mxu1 %v670_v6  ;;  %p742_p8 = scmp.ne.s32.totalorder %s616_s12, %s741_s13  ;;  %p747_p10 = scmp.lt.s32.totalorder %s741_s13, %s741_s13 }
  0x1d   :  { %p748_p11 = por %p747_p10, %p746_p9 }
  0x1e   :  { %655 = vmatmul.mubr.msk.f32.vlgmr.msra.gmra.mrb[0].mxu0 %vm51_vm0, %v829_v8  ;;  %661 = vmatmul.mubr.msk.f32.vlgmr.msra.gmra.mrb[0].mxu1 %vm51_vm0, %v831_v9 }
  0x1f   :  { %657 = vmatprep.mubr.msk.f32.mxu0 %vm51_vm0, %v833_v10  ;;  %663 = vmatprep.mubr.msk.f32.mxu1 %vm51_vm0, %v835_v11  ;;  %p749_p12 = pnand %p748_p11, %p742_p8 }
  0x22   :  { %658 = vmatmul.mubr.msk.f32.gmra.mrb[2].mxu0 %vm51_vm0, %v843_v12  ;;  %664 = vmatmul.mubr.msk.f32.gmra.mrb[2].mxu1 %vm51_vm0, %v847_v13 }
  0xf1   :  { %v656_v15 = vpop.f32.mrb[0].mxu0  ;;  %v662_v16 = vpop.f32.mrb[0].mxu1 }
  0xf2   :  { %v148_v17 = vadd.f32 %v656_v15, %v624_v14  ;;  %v142_v18 = vpop.f32.mrb[1].mxu0  ;;  %v162_v19 = vpop.f32.mrb[1].mxu1  ;;  %v168_v29 = vadd.f32 %v662_v16, %v624_v14 }
  0xf3   :  { %v143_v20 = vadd.f32 %v624_v14, %v142_v18  ;;  %v163_v21 = vadd.f32 %v624_v14, %v162_v19 }
  0xf4   :  { %685 = vtanh.f32 %v148_v17 }
  0xf5   :  { %687 = vtanh.f32 %v143_v20  ;;  %v659_v22 = vpop.f32.mrb[2].mxu0  ;;  %v665_v23 = vpop.f32.mrb[2].mxu1 }
  0xf6   :  { %v158_v24 = vadd.f32 %v659_v22, %v624_v14  ;;  %v152_v25 = vpop.f32.mrb[3].mxu0  ;;  %v172_v26 = vpop.f32.mrb[3].mxu1  ;;  %689 = vtanh.f32 %v163_v21  ;;  %v178_v30 = vadd.f32 %v665_v23, %v624_v14 }
  0xf7   :  { %v153_v27 = vadd.f32 %v624_v14, %v152_v25  ;;  %v173_v28 = vadd.f32 %v624_v14, %v172_v26 }
  0xf8   :  { %691 = vtanh.f32 %v158_v24 }
  0xf9   :  { %693 = vtanh.f32 %v153_v27 }
  0xfa   :  { %695 = vtanh.f32 %v173_v28  ;;  %v770_v28 = vmov 0  }
  0xfb   :  { %697 = vtanh.f32 %v168_v29  ;;  %684 = vset.pattern.permute.xlu0 %v770_v28  ;;  %683 = vset.pattern.permute.xlu1 %v770_v28  ;;  %v293_v29 = vsub.s32 0, %v867_v58 }
  0xfc   :  { %699 = vtanh.f32 %v178_v30  ;;  %v297_v30 = vsub.s32 1, %v867_v58 }
  0xfe   :  { %v686_v32 = vpop.eup %685 }
  0xff   :  { %v688_v33 = vpop.eup %687  ;;  %v197_v34 = vmul.f32 %v686_v32, %v633_v31  ;;  %v305_v32 = vsub.s32 3, %v867_v58 }
 0x100   :  { %v690_v35 = vpop.eup %689  ;;  %v196_v37 = vmul.f32 %v688_v33, %v633_v31 }
 0x101   :  { %v208_v36 = vsel %vm204_vm1, %v197_v34, 0.0  ;;  %v200_v41 = vmul.f32 %v690_v35, %v633_v31 }
 0x102   :  { %v692_v38 = vpop.eup %691  ;;  %209 = vadd.xlane.f32.xlu0 %v208_v36  ;;  %v205_v44 = vsel %vm204_vm1, %v196_v37, 0.0  ;;  %v309_v37 = vsub.s32 4, %v867_v58 }
 0x103   :  { %v694_v39 = vpop.eup %693  ;;  %v199_v40 = vmul.f32 %v692_v38, %v633_v31  ;;  %v217_v47 = vsel %vm204_vm1, %v200_v41, 0.0 }
 0x104   :  { %v696_v42 = vpop.eup %695  ;;  %v198_v45 = vmul.f32 %v694_v39, %v633_v31 }
 0x105   :  { %v214_v43 = vsel %vm204_vm1, %v199_v40, 0.0  ;;  %v698_v46 = vpop.eup %697  ;;  %v202_v48 = vmul.f32 %v696_v42, %v633_v31 }
 0x106   :  { %215 = vadd.xlane.f32.xlu1 %v214_v43  ;;  %206 = vadd.xlane.f32.xlu0 %v205_v44  ;;  %v211_v49 = vsel %vm204_vm1, %v198_v45, 0.0  ;;  %v201_v50 = vmul.f32 %v698_v46, %v633_v31  ;;  %v700_v51 = vpop.eup %699  ;;  %v313_v44 = vsub.s32 5, %v867_v58 }
 0x107   :  { %v223_v52 = vsel %vm204_vm1, %v202_v48, 0.0  ;;  %v203_v54 = vmul.f32 %v700_v51, %v633_v31  ;;  %v301_v31 = vsub.s32 2, %v867_v58  ;;  %v317_v48 = vsub.s32 6, %v867_v58 }
 0x108   :  { %v220_v53 = vsel %vm204_vm1, %v201_v50, 0.0 }
 0x109   :  { %v226_v55 = vsel %vm204_vm1, %v203_v54, 0.0 }
 0x10a   :  { %212 = vadd.xlane.f32.xlu1 %v211_v49  ;;  %218 = vadd.xlane.f32.xlu0 %v217_v47 }
 0x10e   :  { %221 = vadd.xlane.f32.xlu1 %v220_v53  ;;  %224 = vadd.xlane.f32.xlu0 %v223_v52  ;;  %v321_v52 = vsub.s32 7, %v867_v58 }
 0x112   :  { %227 = vadd.xlane.f32.xlu1 %v226_v55 }
 0x18f   :  { %v210_v59 = vpop.xlane.xlu0 %209 }
 0x190   :  { %v246_v0 = vrot.slane %v210_v59, %v870_v60 }
 0x193   :  { %v216_v61 = vpop.xlane.xlu1 %215  ;;  %v207_v62 = vpop.xlane.xlu0 %206 }
 0x194   :  { %v242_v63 = vrot.slane %v207_v62, %v870_v60  ;;  %v254_v6 = vrot.slane %v216_v61, %v870_v60 }
 0x196   :  { %v272_v14 = vsel %vm271_vm2, %v246_v0, %v242_v63 }
 0x197   :  { %v213_v1 = vpop.xlane.xlu1 %212  ;;  %v219_v2 = vpop.xlane.xlu0 %218 }
 0x198   :  { %v250_v3 = vrot.slane %v213_v1, %v870_v60  ;;  %v258_v4 = vrot.slane %v219_v2, %v870_v60 }
 0x19a   :  { %v274_v15 = vsel %vm273_vm3, %v250_v3, %v272_v14 }
 0x19b   :  { %v276_v16 = vsel %vm275_vm4, %v254_v6, %v274_v15  ;;  %v222_v17 = vpop.xlane.xlu1 %221  ;;  %v225_v18 = vpop.xlane.xlu0 %224 }
 0x19c   :  { %v278_v19 = vsel %vm277_vm5, %v258_v4, %v276_v16  ;;  %v262_v20 = vrot.slane %v222_v17, %v870_v60  ;;  %v266_v21 = vrot.slane %v225_v18, %v870_v60 }
 0x19e   :  { %v280_v22 = vsel %vm279_vm6, %v262_v20, %v278_v19 }
 0x19f   :  { %v228_v23 = vpop.xlane.xlu1 %227  ;;  %v282_v25 = vsel %vm281_vm7, %v266_v21, %v280_v22 }
 0x1a0   :  { %v270_v24 = vrot.slane %v228_v23, %v870_v60 }
 0x1a2   :  { %v284_v26 = vsel %vm283_vm8, %v270_v24, %v282_v25 }
 0x1a3   :  { %v287_v27 = vsel %vm286_vm9, %v284_v26, -inf }
 0x1a4   :  { %288 = vmax.xlane.f32.xlu0 %v287_v27 }
 0x231   :  { %v289_v33 = vpop.xlane.xlu0 %288 }
 0x232   :  { %v294_v34 = vrot.slane %v289_v33, %v293_v29  ;;  %v298_v35 = vrot.slane %v289_v33, %v297_v30  ;;  %v302_v36 = vrot.slane %v289_v33, %v301_v31  ;;  %v306_v38 = vrot.slane %v289_v33, %v305_v32 }
 0x233   :  { %v310_v45 = vrot.slane %v289_v33, %v309_v37  ;;  %v314_v49 = vrot.slane %v289_v33, %v313_v44  ;;  %v318_v53 = vrot.slane %v289_v33, %v317_v48 }
 0x234   :  { %v331_v39 = vsub.f32 %v207_v62, %v294_v34  ;;  %v332_v40 = vsub.f32 %v210_v59, %v298_v35  ;;  %v333_v41 = vsub.f32 %v213_v1, %v302_v36  ;;  %v334_v46 = vsub.f32 %v216_v61, %v306_v38 }
 0x235   :  { %v335_v50 = vsub.f32 %v219_v2, %v310_v45  ;;  %v336_v54 = vsub.f32 %v222_v17, %v314_v49  ;;  %v322_v59 = vrot.slane %v289_v33, %v321_v52  ;;  %v337_v61 = vsub.f32 %v225_v18, %v318_v53 }
 0x236   :  { %v339_v42 = vmul.f32 1.442695, %v331_v39  ;;  %v341_v43 = vmul.f32 1.442695, %v332_v40  ;;  %v343_v47 = vmul.f32 1.442695, %v333_v41 }
 0x237   :  { %v345_v51 = vmul.f32 1.442695, %v334_v46  ;;  %v347_v55 = vmul.f32 1.442695, %v335_v50  ;;  %v349_v62 = vmul.f32 1.442695, %v336_v54  ;;  %v338_v0 = vsub.f32 %v228_v23, %v322_v59 }
 0x238   :  { %701 = vpow2.f32 %v339_v42  ;;  %v351_v1 = vmul.f32 1.442695, %v337_v61 }
 0x239   :  { %703 = vpow2.f32 %v341_v43  ;;  %v353_v3 = vmul.f32 1.442695, %v338_v0 }
 0x23a   :  { %705 = vpow2.f32 %v343_v47 }
 0x23b   :  { %707 = vpow2.f32 %v345_v51 }
 0x23c   :  { %709 = vpow2.f32 %v347_v55 }
 0x23d   :  { %711 = vpow2.f32 %v349_v62 }
 0x23e   :  { %713 = vpow2.f32 %v351_v1 }
 0x23f   :  { %715 = vpow2.f32 %v353_v3 }
 0x242   :  { %v702_v56 = vpop.eup %701 }
 0x243   :  { %v704_v57 = vpop.eup %703  ;;  %364 = vperm.xlu1 %683, %v702_v56  }
 0x244   :  { %367 = vperm.xlu0 %684, %v704_v57   ;;  %v706_v63 = vpop.eup %705 }
 0x245   :  { %v708_v2 = vpop.eup %707 }
 0x246   :  { %v710_v4 = vpop.eup %709 }
 0x247   :  { %370 = vperm.xlu1 %683, %v706_v63   ;;  %v712_v6 = vpop.eup %711 }
 0x248   :  { %v714_v14 = vpop.eup %713 }
 0x249   :  { %v716_v15 = vpop.eup %715 }
 0x24b   :  { %373 = vperm.xlu1 %683, %v708_v2  }
 0x24f   :  { %376 = vperm.xlu1 %683, %v710_v4  }
 0x253   :  { %379 = vperm.xlu1 %683, %v712_v6  }
 0x257   :  { %382 = vperm.xlu1 %683, %v714_v14  }
 0x25b   :  { %385 = vperm.xlu1 %683, %v716_v15  }
 0x2c2   :  { %v365_v16 = vpop.permute.xlu1 %364 }
 0x2c3   :  { %v368_v20 = vpop.permute.xlu0 %367  ;;  %v390_v23 = vrot.slane %v365_v16, %v870_v60 }
 0x2c4   :  { %v394_v22 = vrot.slane %v368_v20, %v870_v60 }
 0x2c6   :  { %v371_v17 = vpop.permute.xlu1 %370  ;;  %v419_v28 = vsel %vm271_vm2, %v394_v22, %v390_v23 }
 0x2c7   :  { %v398_v24 = vrot.slane %v371_v17, %v870_v60 }
 0x2c9   :  { %v420_v34 = vsel %vm273_vm3, %v398_v24, %v419_v28 }
 0x2ca   :  { %v374_v18 = vpop.permute.xlu1 %373 }
 0x2cb   :  { %v402_v25 = vrot.slane %v374_v18, %v870_v60 }
 0x2cd   :  { %v421_v36 = vsel %vm275_vm4, %v402_v25, %v420_v34 }
 0x2ce   :  { %v377_v19 = vpop.permute.xlu1 %376 }
 0x2cf   :  { %v406_v26 = vrot.slane %v377_v19, %v870_v60 }
 0x2d1   :  { %v422_v38 = vsel %vm277_vm5, %v406_v26, %v421_v36 }
 0x2d2   :  { %v380_v21 = vpop.permute.xlu1 %379 }
 0x2d3   :  { %v410_v33 = vrot.slane %v380_v21, %v870_v60 }
 0x2d5   :  { %v423_v40 = vsel %vm279_vm6, %v410_v33, %v422_v38 }
 0x2d6   :  { %v383_v27 = vpop.permute.xlu1 %382 }
 0x2d7   :  { %v414_v35 = vrot.slane %v383_v27, %v870_v60 }
 0x2d9   :  { %v424_v42 = vsel %vm281_vm7, %v414_v35, %v423_v40 }
 0x2da   :  { %v386_v39 = vpop.permute.xlu1 %385 }
 0x2db   :  { %v418_v41 = vrot.slane %v386_v39, %v870_v60 }
 0x2dd   :  { %v425_v43 = vsel %vm283_vm8, %v418_v41, %v424_v42 }
 0x2de   :  { %v427_v45 = vsel %vm286_vm9, %v425_v43, 0.0 }
 0x2df   :  { %428 = vadd.xlane.f32.xlu1 %v427_v45 }
 0x36c   :  { %v429_v46 = vpop.xlane.xlu1 %428 }
 0x36d   :  { %717 = vrcp.f32 %v429_v46 }
 0x377   :  { %v718_v47 = vpop.eup %717 }
 0x378   :  { %v435_v49 = vrot.slane %v718_v47, %v293_v29  ;;  %v439_v51 = vrot.slane %v718_v47, %v297_v30  ;;  %v443_v60 = vrot.slane %v718_v47, %v301_v31  ;;  %v447_v55 = vrot.slane %v718_v47, %v305_v32 }
 0x379   :  { %v451_v61 = vrot.slane %v718_v47, %v309_v37  ;;  %v455_v30 = vrot.slane %v718_v47, %v313_v44  ;;  %v459_v31 = vrot.slane %v718_v47, %v317_v48  ;;  %v463_v32 = vrot.slane %v718_v47, %v321_v52 }
 0x37a   :  { %v472_v50 = vmul.f32 %v702_v56, %v435_v49  ;;  %v473_v53 = vmul.f32 %v704_v57, %v439_v51  ;;  %v474_v54 = vmul.f32 %v706_v63, %v443_v60  ;;  %v475_v59 = vmul.f32 %v708_v2, %v447_v55 }
 0x37b   :  { %v476_v29 = vmul.f32 %v710_v4, %v451_v61  ;;  %v477_v56 = vmul.f32 %v712_v6, %v455_v30  ;;  %v478_v57 = vmul.f32 %v714_v14, %v459_v31  ;;  %v479_v62 = vmul.f32 %v716_v15, %v463_v32 }
 0x37c   :  { %482 = vperm.xlu0 %684, %v472_v50  }
 0x380   :  { %487 = vperm.xlu0 %684, %v473_v53  }
 0x384   :  { %492 = vperm.xlu0 %684, %v474_v54  }
 0x388   :  { %497 = vperm.xlu0 %684, %v475_v59  }
 0x38c   :  { %502 = vperm.xlu0 %684, %v476_v29  }
 0x390   :  { %507 = vperm.xlu0 %684, %v477_v56  }
 0x394   :  { %512 = vperm.xlu0 %684, %v478_v57  }
 0x398   :  { %517 = vperm.xlu0 %684, %v479_v62  }
 0x3fb   :  { %v483_v63 = vpop.permute.xlu0 %482 }
 0x3fc   :  { %v520_v44 = vmul.f32 %v483_v63, %v821_v5 }
 0x3fe   :  { %v528_v58 = vsel %vm51_vm0, %v520_v44, 0.0 }
 0x3ff   :  { %v488_v37 = vpop.permute.xlu0 %487  ;;  %v529_v16 = vrot.slane %v528_v58, 4 }
 0x400   :  { %v521_v0 = vmul.f32 %v488_v37, %v829_v8 }
 0x401   :  { %v530_v20 = vadd.f32 %v529_v16, %v528_v58 }
 0x402   :  { %v535_v3 = vsel %vm51_vm0, %v521_v0, 0.0 }
 0x403   :  { %v493_v1 = vpop.permute.xlu0 %492  ;;  %v536_v6 = vrot.slane %v535_v3, 4  ;;  %v531_v28 = vrot.slane %v530_v20, 2 }
 0x404   :  { %v522_v2 = vmul.f32 %v493_v1, %v833_v10 }
 0x405   :  { %v537_v18 = vadd.f32 %v536_v6, %v535_v3  ;;  %v532_v42 = vadd.f32 %v531_v28, %v530_v20 }
 0x406   :  { %v542_v48 = vsel %vm51_vm0, %v522_v2, 0.0 }
 0x407   :  { %v498_v4 = vpop.permute.xlu0 %497  ;;  %v543_v14 = vrot.slane %v542_v48, 4 }
 0x408   :  { %v523_v52 = vmul.f32 %v498_v4, %v843_v12  ;;  %v538_v12 = vrot.slane %v537_v18, 2 }
 0x409   :  { %v544_v10 = vadd.f32 %v543_v14, %v542_v48 }
 0x40a   :  { %v549_v15 = vsel %vm51_vm0, %v523_v52, 0.0  ;;  %v539_v38 = vadd.f32 %v538_v12, %v537_v18 }
 0x40b   :  { %v550_v8 = vrot.slane %v549_v15, 4  ;;  %v503_v17 = vpop.permute.xlu0 %502  ;;  %v545_v26 = vrot.slane %v544_v10, 2 }
 0x40c   :  { %v524_v5 = vmul.f32 %v503_v17, %v825_v7  ;;  %v540_v50 = vrot.slane %v539_v38, 1 }
 0x40d   :  { %v551_v21 = vadd.f32 %v550_v8, %v549_v15  ;;  %v546_v40 = vadd.f32 %v545_v26, %v544_v10 }
 0x40e   :  { %v556_v19 = vsel %vm51_vm0, %v524_v5, 0.0  ;;  %v541_v30 = vadd.f32 %v540_v50, %v539_v38 }
 0x40f   :  { %v557_v22 = vrot.slane %v556_v19, 4  ;;  %v508_v23 = vpop.permute.xlu0 %507  ;;  %v552_v33 = vrot.slane %v551_v21, 2  ;;  %v547_v60 = vrot.slane %v546_v40, 1 }
 0x410   :  { %v525_v24 = vmul.f32 %v508_v23, %v831_v9 }
 0x411   :  { %v558_v25 = vadd.f32 %v557_v22, %v556_v19  ;;  %v553_v43 = vadd.f32 %v552_v33, %v551_v21  ;;  %v548_v32 = vadd.f32 %v547_v60, %v546_v40 }
 0x412   :  { %v563_v27 = vsel %vm51_vm0, %v525_v24, 0.0 }
 0x413   :  { %v564_v34 = vrot.slane %v563_v27, 4  ;;  %v513_v35 = vpop.permute.xlu0 %512  ;;  %v559_v7 = vrot.slane %v558_v25, 2  ;;  %v554_v55 = vrot.slane %v553_v43, 1 }
 0x414   :  { %v526_v36 = vmul.f32 %v513_v35, %v835_v11  ;;  %v533_v11 = vrot.slane %v532_v42, 1 }
 0x415   :  { %v565_v39 = vadd.f32 %v564_v34, %v563_v27  ;;  %v560_v47 = vadd.f32 %v559_v7, %v558_v25  ;;  %v555_v63 = vadd.f32 %v554_v55, %v553_v43 }
 0x416   :  { %v570_v41 = vsel %vm51_vm0, %v526_v36, 0.0  ;;  %v534_v62 = vadd.f32 %v533_v11, %v532_v42 }
 0x417   :  { %v566_v9 = vrot.slane %v565_v39, 2  ;;  %v571_v45 = vrot.slane %v570_v41, 4  ;;  %v518_v46 = vpop.permute.xlu0 %517  ;;  %v561_v29 = vrot.slane %v560_v47, 1 }
 0x418   :  { %v527_v49 = vmul.f32 %v518_v46, %v847_v13  ;;  %v600_v1 = vsel %vm271_vm2, %v541_v30, %v534_v62 }
 0x419   :  { %v567_v51 = vadd.f32 %v566_v9, %v565_v39  ;;  %v572_v53 = vadd.f32 %v571_v45, %v570_v41  ;;  %v562_v0 = vadd.f32 %v561_v29, %v560_v47  ;;  %v601_v3 = vsel %vm273_vm3, %v548_v32, %v600_v1 }
 0x41a   :  { %v577_v54 = vsel %vm51_vm0, %v527_v49, 0.0  ;;  %v602_v4 = vsel %vm275_vm4, %v555_v63, %v601_v3 }
 0x41b   :  { %v573_v59 = vrot.slane %v572_v53, 2  ;;  %v578_v61 = vrot.slane %v577_v54, 4  ;;  %v568_v56 = vrot.slane %v567_v51, 1  ;;  %v603_v52 = vsel %vm277_vm5, %v562_v0, %v602_v4 }
 0x41d   :  { %v574_v31 = vadd.f32 %v573_v59, %v572_v53  ;;  %v579_v57 = vadd.f32 %v578_v61, %v577_v54  ;;  %v569_v44 = vadd.f32 %v568_v56, %v567_v51 }
 0x41f   :  { %v575_v37 = vrot.slane %v574_v31, 1  ;;  %v580_v13 = vrot.slane %v579_v57, 2  ;;  %v604_v14 = vsel %vm279_vm6, %v569_v44, %v603_v52 }
 0x421   :  { %v581_v2 = vadd.f32 %v580_v13, %v579_v57  ;;  %v576_v48 = vadd.f32 %v575_v37, %v574_v31 }
 0x423   :  { %v582_v58 = vrot.slane %v581_v2, 1  ;;  %v605_v15 = vsel %vm281_vm7, %v576_v48, %v604_v14 }
 0x425   :  { %v583_v6 = vadd.f32 %v582_v58, %v581_v2 }
 0x427   :  { %v606_v16 = vsel %vm283_vm8, %v583_v6, %v605_v15 }
 0x428   :  { %608 = vst.msk [vmem:[#allocation5] sm:$0xff] %vm51_vm0, %v606_v16 }
 0x429   :  { %752 = shalt.err (!%p749_p12)
}
 0x42a   :  { %s753_s16 = scalar_lea.hbm %s984_s4, 128 }
 0x42b   :  { %p754_p13 = scmp.ne.s32.totalorder %s984_s4, %s753_s16  ;;  %p757_p0 = scmp.lt.u32.totalorder %s753_s16, %s984_s4 }
 0x42d   :  { %p759_p1 = pnand %p757_p0, %p754_p13 }
 0x42f   :  { %762 = shalt.err (!%p759_p1)
}
 0x430   :  { %618 = dma.vmem_to_hbm [thread:$0]  %s616_s12, 128, %s984_s4, [#allocation4]  }
 0x431   :  { %765 = dma.done.wait [#allocation4], 128  }
 0x432   :  { %766 = vsyncadd [#allocation4], 4294967168 }
 0x433   :  { %622 = vsyncpa [#allocation3], 1 }
 0x434   :  { %623 = vsyncpa [#allocation4], 1 }

</bundles_post_ra>
